<compile_context>
chip_gen: v5e
topology: v5e:2x2
jax: 0.10.0
libtpu: 0.0.40
codegen_flags: <defaults>
</compile_context>

<pallas_src>
import jax
import jax.numpy as jnp
from jax import lax
from jax.experimental import pallas as pl
from jax.experimental.pallas import tpu as pltpu


def _make_attention_kernel(mm_dtype):
    """Build the kernel with matmul-operand dtype baked in (f32 or bf16)."""

    def attention_kernel(q_ref, c_ref, wi_ref, wm_ref, wq_ref, o_ref):
        # q_ref:  (1, TO, D)  query tile (already cast to mm_dtype in the wrapper)
        # c_ref:  (1, Q,  D)  context for this batch element (mm_dtype)
        # wi_ref: (D, D)      W_in^T            (mm_dtype)
        # wm_ref: (D, D)      W_out[:, :D]^T    (mm_dtype)
        # wq_ref: (D, D)      W_out[:, D:]^T    (mm_dtype)
        # o_ref:  (1, TO, D)  output (f32)
        q = q_ref[0]            # (TO, D)
        ctx = c_ref[0]          # (Q, D)

        # linear_in: q' = q @ W_in^T  (weights pre-transposed -> plain dot, no .T)
        qg_f32 = jnp.dot(q, wi_ref[...], preferred_element_type=jnp.float32)  # (TO, D)
        qg = qg_f32.astype(mm_dtype)

        # scores = q' @ ctx^T, contracting the last dims directly (no ctx.T materialized)
        scores = lax.dot_general(
            qg, ctx,
            dimension_numbers=(((1,), (1,)), ((), ())),
            preferred_element_type=jnp.float32)                               # (TO, Q)

        # numerically stable softmax, kept entirely in f32 (VPU/EUP path)
        m = jnp.max(scores, axis=-1, keepdims=True)
        e = jnp.exp(scores - m)
        denom = jnp.sum(e, axis=-1, keepdims=True)
        weights = e * pl.reciprocal(denom, approx=False)                      # (TO, Q) f32

        # mix = weights @ ctx
        mix = jnp.dot(weights.astype(mm_dtype), ctx,
                      preferred_element_type=jnp.float32)                     # (TO, D)

        # output = cat([mix, q'], -1) @ W_out^T, split into two pre-transposed matmuls
        out = (jnp.dot(mix.astype(mm_dtype), wm_ref[...],
                       preferred_element_type=jnp.float32)
               + jnp.dot(qg, wq_ref[...], preferred_element_type=jnp.float32))
        o_ref[0] = out.astype(o_ref.dtype)

    return attention_kernel


def _pick_o_tile(o):
    # Tile the output-length axis when it is large; otherwise take it whole
    # (a partial tile's last-two block dims must be (8,128)-divisible).
    for t in (512, 256, 128):
        if o % t == 0:
            return t
    return o


def attention_pallas(query, context, w_in, w_out, *, matmul_dtype=jnp.float32):
    """query: (B, O, D) f32, context: (B, Q, D) f32,
    w_in: (D, D) = linear_in.weight [out,in], w_out: (D, 2D) = linear_out.weight [out,in].
    matmul_dtype=jnp.bfloat16 enables bf16 MXU operands (f32 accumulation) on v6e/v7x."""
    B, O, D = query.shape
    Q = context.shape[1]
    TO = _pick_o_tile(O)

    # Layout plumbing done once in XLA (zero per-grid-step cost inside the kernel):
    # pre-transpose W_in and split + pre-transpose W_out so the kernel does plain x @ w.
    w_in_t = jnp.transpose(w_in).astype(matmul_dtype)          # (D, D)
    w_mix_t = jnp.transpose(w_out[:, :D]).astype(matmul_dtype)  # (D, D) acts on mix
    w_qg_t = jnp.transpose(w_out[:, D:]).astype(matmul_dtype)   # (D, D) acts on q'
    q_in = query.astype(matmul_dtype)
    c_in = context.astype(matmul_dtype)

    return pl.pallas_call(
        _make_attention_kernel(matmul_dtype),
        out_shape=jax.ShapeDtypeStruct((B, O, D), query.dtype),
        grid_spec=pltpu.PrefetchScalarGridSpec(
            num_scalar_prefetch=0,
            grid=(B, O // TO),
            in_specs=[
                pl.BlockSpec((1, TO, D), lambda b, i: (b, i, 0)),
                pl.BlockSpec((1, Q, D), lambda b, i: (b, 0, 0)),
                # Constant-index weight blocks: revisited (stay resident), not re-fetched.
                pl.BlockSpec((D, D), lambda b, i: (0, 0)),
                pl.BlockSpec((D, D), lambda b, i: (0, 0)),
                pl.BlockSpec((D, D), lambda b, i: (0, 0)),
            ],
            out_specs=pl.BlockSpec((1, TO, D), lambda b, i: (b, i, 0)),
        ),
        compiler_params=pltpu.CompilerParams(
            dimension_semantics=("parallel", "parallel")),
    )(q_in, c_in, w_in_t, w_mix_t, w_qg_t)


def attention_reference(query, context, w_in, w_out):
    # Plain-JAX mirror of the PyTorch forward, for verification.
    qg = jnp.einsum("bod,ed->boe", query, w_in)
    scores = jnp.einsum("bod,bqd->boq", qg, context)
    weights = jax.nn.softmax(scores, axis=-1)
    mix = jnp.einsum("boq,bqd->bod", weights, context)
    combined = jnp.concatenate([mix, qg], axis=-1)
    return jnp.einsum("boc,dc->bod", combined, w_out)


if __name__ == "__main__":
    # D=128 keeps the feature (lane) dim dense; the module's typical use is D=256.
    B, O, Q, D = 2, 8, 8, 128
    key = jax.random.PRNGKey(0)
    k_q, k_c, k_win, k_wout = jax.random.split(key, 4)

    query = jax.random.normal(k_q, (B, O, D), dtype=jnp.float32)
    context = jax.random.normal(k_c, (B, Q, D), dtype=jnp.float32)

    # Deterministic parameter init mimicking nn.Linear default U(-1/sqrt(fan_in), 1/sqrt(fan_in)).
    bound_in = 1.0 / (D ** 0.5)
    bound_out = 1.0 / ((2 * D) ** 0.5)
    w_in = jax.random.uniform(k_win, (D, D), minval=-bound_in, maxval=bound_in,
                              dtype=jnp.float32)           # linear_in.weight  [D, D]
    w_out = jax.random.uniform(k_wout, (D, 2 * D), minval=-bound_out, maxval=bound_out,
                               dtype=jnp.float32)           # linear_out.weight [D, 2D]

    ref = attention_reference(query, context, w_in, w_out)

    # f32 path (exact match to the PyTorch module's arithmetic).
    out_f32 = attention_pallas(query, context, w_in, w_out, matmul_dtype=jnp.float32)
    jax.block_until_ready(out_f32)
    assert out_f32.shape == (B, O, D)
    assert jnp.allclose(out_f32, ref, atol=1e-4, rtol=1e-4), "f32 kernel mismatch vs reference"

    # bf16-operand path (f32 accumulation / f32 softmax) — the v6e/v7x MXU fast path.
    out_bf16 = attention_pallas(query, context, w_in, w_out, matmul_dtype=jnp.bfloat16)
    jax.block_until_ready(out_bf16)
    assert jnp.allclose(out_bf16, ref, atol=1e-1, rtol=1e-1), "bf16 kernel mismatch vs reference"

    print("KERNEL_OK")
</pallas_src>

<mosaic_0001>
module attributes {stable_mosaic.version = 11 : i64} {
  func.func @attention_kernel(%arg0: i32, %arg1: i32, %arg2: memref<1x8x128xf32, #tpu.memory_space<vmem>>, %arg3: memref<1x8x128xf32, #tpu.memory_space<vmem>>, %arg4: memref<128x128xf32, #tpu.memory_space<vmem>>, %arg5: memref<128x128xf32, #tpu.memory_space<vmem>>, %arg6: memref<128x128xf32, #tpu.memory_space<vmem>>, %arg7: memref<1x8x128xf32, #tpu.memory_space<vmem>>) attributes {dimension_semantics = [#tpu.dimension_semantics<parallel>, #tpu.dimension_semantics<parallel>], iteration_bounds = array<i64: 2, 1>, scalar_prefetch = 0 : i64, scratch_operands = 0 : i64, tpu.core_type = #tpu.core_type<tc>, window_params = [{transform_indices = @transform_0, window_bounds = array<i64: 1, 8, 128>}, {transform_indices = @transform_1, window_bounds = array<i64: 1, 8, 128>}, {pipeline_mode = #tpu.pipeline_mode<synchronous>, transform_indices = @transform_2, window_bounds = array<i64: 128, 128>}, {pipeline_mode = #tpu.pipeline_mode<synchronous>, transform_indices = @transform_3, window_bounds = array<i64: 128, 128>}, {pipeline_mode = #tpu.pipeline_mode<synchronous>, transform_indices = @transform_4, window_bounds = array<i64: 128, 128>}, {transform_indices = @transform_5, window_bounds = array<i64: 1, 8, 128>}]} {
    %c0 = arith.constant 0 : index
    %c0_0 = arith.constant 0 : index
    %c0_1 = arith.constant 0 : index
    %0 = vector.load %arg2[%c0, %c0_0, %c0_1] : memref<1x8x128xf32, #tpu.memory_space<vmem>>, vector<1x8x128xf32>
    %1 = vector.shape_cast %0 : vector<1x8x128xf32> to vector<8x128xf32>
    %c0_2 = arith.constant 0 : index
    %c0_3 = arith.constant 0 : index
    %c0_4 = arith.constant 0 : index
    %2 = vector.load %arg3[%c0_2, %c0_3, %c0_4] : memref<1x8x128xf32, #tpu.memory_space<vmem>>, vector<1x8x128xf32>
    %3 = vector.shape_cast %2 : vector<1x8x128xf32> to vector<8x128xf32>
    %c0_5 = arith.constant 0 : index
    %c0_6 = arith.constant 0 : index
    %4 = vector.load %arg4[%c0_5, %c0_6] : memref<128x128xf32, #tpu.memory_space<vmem>>, vector<128x128xf32>
    %cst = arith.constant dense<0.000000e+00> : vector<8x128xf32>
    %5 = tpu.matmul %1, %4, %cst {dimension_numbers = #tpu.dot_dimension_numbers<[1], [0], [0], [1], [0, 0, 1, 1], [], []>} : vector<8x128xf32>, vector<128x128xf32>, vector<8x128xf32> -> vector<8x128xf32>
    %cst_7 = arith.constant dense<0.000000e+00> : vector<8x8xf32>
    %6 = tpu.matmul %5, %3, %cst_7 {dimension_numbers = #tpu.dot_dimension_numbers<[1], [1], [0], [0], [0, 0, 1, 0], [], []>} : vector<8x128xf32>, vector<8x128xf32>, vector<8x8xf32> -> vector<8x8xf32>
    %cst_8 = arith.constant dense<0xFF800000> : vector<8xf32>
    %7 = vector.multi_reduction <maximumf>, %6, %cst_8 [1] : vector<8x8xf32> to vector<8xf32>
    %8 = vector.shape_cast %7 : vector<8xf32> to vector<8x1xf32>
    %9 = vector.broadcast %8 : vector<8x1xf32> to vector<8x8xf32>
    %10 = arith.subf %6, %9 : vector<8x8xf32>
    %11 = math.exp %10 : vector<8x8xf32>
    %cst_9 = arith.constant dense<0.000000e+00> : vector<8xf32>
    %12 = vector.multi_reduction <add>, %11, %cst_9 [1] : vector<8x8xf32> to vector<8xf32>
    %13 = vector.shape_cast %12 : vector<8xf32> to vector<8x1xf32>
    %14 = tpu.reciprocal %13 : vector<8x1xf32> -> vector<8x1xf32>
    %15 = vector.broadcast %14 : vector<8x1xf32> to vector<8x8xf32>
    %16 = arith.mulf %11, %15 : vector<8x8xf32>
    %cst_10 = arith.constant dense<0.000000e+00> : vector<8x128xf32>
    %17 = tpu.matmul %16, %3, %cst_10 {dimension_numbers = #tpu.dot_dimension_numbers<[1], [0], [0], [1], [0, 0, 1, 1], [], []>} : vector<8x8xf32>, vector<8x128xf32>, vector<8x128xf32> -> vector<8x128xf32>
    %c0_11 = arith.constant 0 : index
    %c0_12 = arith.constant 0 : index
    %18 = vector.load %arg5[%c0_11, %c0_12] : memref<128x128xf32, #tpu.memory_space<vmem>>, vector<128x128xf32>
    %cst_13 = arith.constant dense<0.000000e+00> : vector<8x128xf32>
    %19 = tpu.matmul %17, %18, %cst_13 {dimension_numbers = #tpu.dot_dimension_numbers<[1], [0], [0], [1], [0, 0, 1, 1], [], []>} : vector<8x128xf32>, vector<128x128xf32>, vector<8x128xf32> -> vector<8x128xf32>
    %c0_14 = arith.constant 0 : index
    %c0_15 = arith.constant 0 : index
    %20 = vector.load %arg6[%c0_14, %c0_15] : memref<128x128xf32, #tpu.memory_space<vmem>>, vector<128x128xf32>
    %cst_16 = arith.constant dense<0.000000e+00> : vector<8x128xf32>
    %21 = tpu.matmul %5, %20, %cst_16 {dimension_numbers = #tpu.dot_dimension_numbers<[1], [0], [0], [1], [0, 0, 1, 1], [], []>} : vector<8x128xf32>, vector<128x128xf32>, vector<8x128xf32> -> vector<8x128xf32>
    %22 = arith.addf %19, %21 : vector<8x128xf32>
    %c0_17 = arith.constant 0 : index
    %c0_18 = arith.constant 0 : index
    %c0_19 = arith.constant 0 : index
    %23 = vector.load %arg7[%c0_17, %c0_18, %c0_19] : memref<1x8x128xf32, #tpu.memory_space<vmem>>, vector<1x8x128xf32>
    %24 = vector.shape_cast %23 : vector<1x8x128xf32> to vector<8x128xf32>
    %25 = vector.shape_cast %22 : vector<8x128xf32> to vector<1x8x128xf32>
    tpu.vector_store %arg7[%c0_17, %c0_18, %c0_19], %25 {strides = array<i32>} : memref<1x8x128xf32, #tpu.memory_space<vmem>>, vector<1x8x128xf32>,
    return
  }
  func.func @transform_0(%arg0: i32, %arg1: i32) -> (i32, i32, i32) {
    %c0_i32 = arith.constant 0 : i32
    %c0_i32_0 = arith.constant 0 : i32
    return %arg0, %arg1, %c0_i32 : i32, i32, i32
  }
  func.func @transform_1(%arg0: i32, %arg1: i32) -> (i32, i32, i32) {
    %c0_i32 = arith.constant 0 : i32
    %c0_i32_0 = arith.constant 0 : i32
    %c0_i32_1 = arith.constant 0 : i32
    return %arg0, %c0_i32, %c0_i32_0 : i32, i32, i32
  }
  func.func @transform_2(%arg0: i32, %arg1: i32) -> (i32, i32) {
    %c0_i32 = arith.constant 0 : i32
    %c0_i32_0 = arith.constant 0 : i32
    %c0_i32_1 = arith.constant 0 : i32
    return %c0_i32, %c0_i32_0 : i32, i32
  }
  func.func @transform_3(%arg0: i32, %arg1: i32) -> (i32, i32) {
    %c0_i32 = arith.constant 0 : i32
    %c0_i32_0 = arith.constant 0 : i32
    %c0_i32_1 = arith.constant 0 : i32
    return %c0_i32, %c0_i32_0 : i32, i32
  }
  func.func @transform_4(%arg0: i32, %arg1: i32) -> (i32, i32) {
    %c0_i32 = arith.constant 0 : i32
    %c0_i32_0 = arith.constant 0 : i32
    %c0_i32_1 = arith.constant 0 : i32
    return %c0_i32, %c0_i32_0 : i32, i32
  }
  func.func @transform_5(%arg0: i32, %arg1: i32) -> (i32, i32, i32) {
    %c0_i32 = arith.constant 0 : i32
    %c0_i32_0 = arith.constant 0 : i32
    return %arg0, %arg1, %c0_i32 : i32, i32, i32
  }
}

</mosaic_0001>

<bundles_post_ra>
// kernel: tpu_custom_call.1
= control target key start
LH: loop header
LB: loop body
LE: loop exit
PB: predicated region body
PF: predicated region fallthrough
CT: control target
= control target key end

     0   :  { %s1264_s0 = inlined_call_operand.hbm [shape: f32[2,8,128], index: 0, kind: input, shape index: {}]   ;;  %s1265_s1 = inlined_call_operand.hbm [shape: f32[2,8,128], index: 1, kind: input, shape index: {}]   ;;  %s1266_s2 = inlined_call_operand.hbm [shape: f32[128,128], index: 2, kind: input, shape index: {}]   ;;  %s1267_s3 = inlined_call_operand.hbm [shape: f32[128,128], index: 3, kind: input, shape index: {}]   ;;  %s1268_s4 = inlined_call_operand.hbm [shape: f32[128,128], index: 4, kind: input, shape index: {}]   ;;  %s1269_s5 = inlined_call_operand.hbm [shape: f32[2,8,128], index: 5, kind: output, shape index: {}]  }
   0x1   :  { %1272 = sst [smem:[#allocation20_spill]] %s1266_s2 }
   0x2   :  { %1273 = sst [smem:[#allocation21_spill]] %s1267_s3 }
   0x3   :  { %1274 = sst [smem:[#allocation22_spill]] %s1268_s4 }
   0x4   :  { %10 = vsyncpa [#allocation3], 0 }
   0x5   :  { %12 = vsyncpa [#allocation3 + $0x1], 0 }
   0x6   :  { %13 = vsyncpa [#allocation6], 0 }
   0x7   :  { %15 = vsyncpa [#allocation6 + $0x1], 0 }
   0x8   :  { %16 = vsyncpa [#allocation9], 0 }
   0x9   :  { %17 = vsyncpa [#allocation4], 0 }
   0xa   :  { %19 = vsyncpa [#allocation4 + $0x1], 0  ;;  %s1082_s18 = smov 0   ;;  %s1084_s19 = smov 0  }
   0xb   :  { %s1086_s20 = smov 0   ;;  %s1088_s21 = smov 0  }
   0xc   :  { %s1090_s22 = smov 0   ;;  %s1092_s23 = smov 0  }
   0xd LB: > { %1275 = sst [smem:[#allocation17_spill]] %s1041_s22  ;;  %s1113_s24 = sadd.s32 4294967295, %s1045_s23   ;;  %s1045_s23 = sphi %s1092_s23, %s25_s23   ;;  %s1041_s22 = sphi %s1090_s22, %s1289_s22   ;;  %s1037_s21 = sphi %s1088_s21, %s1288_s21   ;;  %s1033_s20 = sphi %s1086_s20, %s1292_s20   ;;  %s1029_s19 = sphi %s1084_s19, %s1291_s19   ;;  %s1025_s18 = sphi %s1082_s18, %s1290_s18  }
   0xe   : > { %p676_p0 = scmp.ge.s32.totalorder %s1045_s23, 1  ;;  %p60_p1 = scmp.eq.s32.totalorder %s1113_s24, 0 }
   0xf   : > { %p187_p2 = scmp.lt.s32.totalorder %s1045_s23, 3  ;;  %s1276_s2 = sld [smem:[#allocation20_spill]] }
  0x10   : > { %s1047_s29 = smov [#allocation7]   ;;  %p680_p6 = scmp.ge.s32.totalorder %s1045_s23, 2 }
  0x11   : > { %p1121_p3 = pnand %p676_p0, %p187_p2  ;;  %s200_s30 = sshll.u32 %s1047_s29, 4  ;;  %s201_s30 = int_to_ptr.vmem [resolvable:$true] %s200_s30 }
  0x12   : > { %s1279_s3 = sld [smem:[#allocation21_spill]]  ;;  %s1048_s10 = smov 128  }
  0x13   : > { %p715_p4 = pneg %p1121_p3  ;;  %s1049_s11 = smov 8  }
  0x14   : > { %s1050_s12 = smov [#allocation8]   ;;  %s1280_s4 = sld [smem:[#allocation22_spill]] }
  0x15   : > { %s198_s27 = sshll.u32 %s1276_s2, 4  ;;  %p1129_p5 = pnand %p715_p4, %p60_p1  ;;  %s199_s27 = int_to_ptr.hbm [resolvable:$true] %s198_s27 }
  0x16   : > { %s214_s13 = sshll.u32 %s1050_s12, 4  ;;  %s1051_s17 = smov [#allocation10]   ;;  %s215_s13 = int_to_ptr.vmem [resolvable:$true] %s214_s13 }
  0x17   : > { %718 = dma.hbm_to_vmem [thread:$0]  (!%p1129_p5), %s199_s27, 2048, %s201_s30, [#allocation6], %s1048_s10, %s1048_s10, %s1049_s11  }
  0x18   : > { %s212_s9 = sshll.u32 %s1279_s3, 4  ;;  %s228_s25 = sshll.u32 %s1051_s17, 4  ;;  %s213_s9 = int_to_ptr.hbm [resolvable:$true] %s212_s9  ;;  %s229_s25 = int_to_ptr.vmem [resolvable:$true] %s228_s25 }
  0x19   : > { %721 = dma.hbm_to_vmem [thread:$0]  (!%p1129_p5), %s213_s9, 2048, %s215_s13, [#allocation9], %s1048_s10, %s1048_s10, %s1049_s11  }
  0x1a   : > { %s226_s16 = sshll.u32 %s1280_s4, 4  ;;  %s675_s26 = sadd.s32 4294967294, %s1045_s23   ;;  %s227_s16 = int_to_ptr.hbm [resolvable:$true] %s226_s16 }
  0x1b   : > { %724 = dma.hbm_to_vmem [thread:$0]  (!%p1129_p5), %s227_s16, 2048, %s229_s25, [#allocation9], %s1048_s10, %s1048_s10, %s1049_s11  }
  0x1c   : > { %s37_s27 = sadd.s32 1, %s1041_s22  ;;  %s46_s29 = sadd.s32 1, %s1033_s20 }
  0x1d   : > { %p39_p7 = scmp.ge.s32.totalorder %s37_s27, 2  ;;  %p53_p8 = scmp.ne.s32.totalorder %s1033_s20, %s1029_s19 }
  0x1e   : > { %p54_p9 = scmp.eq.s32.totalorder %s1045_s23, 0  ;;  %p59_p10 = scmp.ne.s32.totalorder %s1029_s19, %s1025_s18 }
  0x1f   : > { %s1294_s27 = smov (%p39_p7, %s37_s27), 0  ;;  %p174_p13 = scmp.eq.s32.totalorder %s1113_s24, 1 }
  0x20   : > { %1281 = sst [smem:[#allocation18_spill]] %s1294_s27  ;;  %p1156_p11 = por %p54_p9, %p53_p8 }
  0x21   : > { %p1162_p12 = por %p60_p1, %p59_p10  ;;  %s41_s7 = ssub.s32 %s1041_s22, %s1294_s27 }
  0x22   : > { %p44_p0 = scmp.eq.s32.totalorder %s41_s7, 0  ;;  %p180_p2 = scmp.eq.s32.totalorder %s675_s26, 1 }
  0x23   : > { %p1169_p4 = por %p174_p13, %p53_p8  ;;  %p739_p5 = scmp.lt.s32.totalorder %s1045_s23, 2 }
  0x24   : > { %s1175_s9 = scalar_select %p44_p0, %s1033_s20, %s46_s29  }
  0x25   : > { %p1177_p7 = por %p180_p2, %p59_p10  ;;  %s242_s11 = sand.u32 1, %s1033_s20  }
  0x26   : > { %1285 = sst [smem:[#allocation19_spill]] %s1175_s9  ;;  %s681_s12 = sshll.u32 %s242_s11, 3 }
  0x27   : > { %s682_s13 = sshll.u32 %s1041_s22, 3  ;;  %s246_s17 = scalar_lea.vmem [#allocation2], %s681_s12 }
  0x28   : > { %s251_s16 = scalar_lea.hbm %s1264_s0, %s682_s13  ;;  %s255_s25 = sshll.u32 %s246_s17, 4  ;;  %s256_s25 = int_to_ptr.vmem [resolvable:$true] %s255_s25 }
  0x29   : > { %s253_s26 = sshll.u32 %s251_s16, 4  ;;  %p726_p8 = pnand %p739_p5, %p1156_p11  ;;  %s254_s26 = int_to_ptr.hbm [resolvable:$true] %s253_s26 }
  0x2a   : > { %s270_s2 = scalar_lea.hbm %s1265_s1, %s682_s13  ;;  %s262_s3 = sand.u32 1, %s1045_s23  }
  0x2b   : > { %s243_s4 = scalar_lea.sflag [#allocation3], %s242_s11  ;;  %s272_s27 = sshll.u32 %s270_s2, 4  ;;  %s273_s27 = int_to_ptr.hbm [resolvable:$true] %s272_s27 }
  0x2c   : > { %728 = dma.hbm_to_vmem [thread:$0]  (!%p726_p8), %s254_s26, 128, %s256_s25, %s243_s4  }
  0x2d   : > { %s266_s22 = scalar_lea.vmem [#allocation5], %s681_s12  ;;  %s263_s14 = scalar_lea.sflag [#allocation6], %s262_s3 }
  0x2e   : > { %s274_s9 = sshll.u32 %s266_s22, 4  ;;  %283 = sbr.rel (%p1121_p3) target bundleno = 870 (0x366), region = 40  ;;  %s275_s9 = int_to_ptr.vmem [resolvable:$true] %s274_s9 }
  0x2f   : > { %731 = dma.hbm_to_vmem [thread:$0]  (!%p726_p8), %s273_s27, 128, %s275_s9, %s263_s14  }
  0x30   : > { %s1195_s30 = sand.u32 (!%p1121_p3), 1, %s1029_s19  }
  0x31   : > { %s1198_s13 = sshll.u32 (!%p1121_p3), %s1195_s30, 3  ;;  %s286_s4 = scalar_lea.sflag (!%p1121_p3), [#allocation3], %s1195_s30 }
  0x32   : > { %s289_s2 = scalar_lea.vmem (!%p1121_p3), [#allocation2], %s1198_s13 }
  0x33   : > { %1004 = dma.done.wait (%p1162_p12), %s286_s4, 128  }
  0x34   : > { %1006 = vsyncadd (%p1162_p12), %s286_s4, 4294967168  ;;  %s295_s3 = sand.u32 1, %s1113_s24   ;;  %s299_s28 = scalar_lea.vmem [#allocation5], %s1198_s13 }
  0x35   : > { %s296_s22 = scalar_lea.sflag [#allocation6], %s295_s3 }
  0x36   : > { %1008 = dma.done.wait (%p1162_p12), %s296_s22, 128  }
  0x37   : > { %1010 = vsyncadd (%p1162_p12), %s296_s22, 4294967168 }
  0x38   : > { %1012 = dma.done.wait (%p60_p1), [#allocation6], 2048  }
  0x39   : > { %1014 = vsyncadd (%p60_p1), [#allocation6], 4294965248 }
  0x3a   : > { %1016 = dma.done.wait (%p60_p1), [#allocation9], 4096  }
  0x3b   : > { %1018 = vsyncadd (%p60_p1), [#allocation9], 4294963200  ;;  %v364_v0 = vld [vmem:[#allocation7 + $0x78] sm:$0xff]  ;;  %v363_v1 = vld [vmem:[#allocation7 + $0x70] sm:$0xff]  ;;  %vm405_vm0 = vcmask 64512   ;;  %s694_s24 = sshll.u32 %s1037_s21, 3 }
  0x3c   : > { %365 = vmatpush.msra.mxu0 %v364_v0  ;;  %v362_v2 = vld [vmem:[#allocation7 + $0x68] sm:$0xff]  ;;  %v361_v3 = vld [vmem:[#allocation7 + $0x60] sm:$0xff]  ;;  %v484_v4 = vld [vmem:[#allocation10 + $0x78] sm:$0xff]  ;;  %s538_s9 = scalar_lea.hbm %s1269_s5, %s694_s24  ;;  %s346_s11 = scalar_lea.vmem [#allocation11], %s1198_s13 }
  0x3d   : > { %v360_v5 = vld [vmem:[#allocation7 + $0x58] sm:$0xff]  ;;  %485 = vmatpush.msra.mxu3 %v484_v4  ;;  %v483_v6 = vld [vmem:[#allocation10 + $0x70] sm:$0xff]  ;;  %v482_v7 = vld [vmem:[#allocation10 + $0x68] sm:$0xff]  ;;  %s540_s12 = sshll.u32 %s346_s11, 4  ;;  %s542_s15 = sshll.u32 %s538_s9, 4  ;;  %s541_s12 = int_to_ptr.vmem [resolvable:$true] %s540_s12  ;;  %s543_s15 = int_to_ptr.hbm [resolvable:$true] %s542_s15 }
  0x3e   : > { %366 = vmatpush.msra.mxu0 %v363_v1  ;;  %v359_v8 = vld [vmem:[#allocation7 + $0x50] sm:$0xff]  ;;  %v481_v9 = vld [vmem:[#allocation10 + $0x60] sm:$0xff]  ;;  %v358_v10 = vld [vmem:[#allocation7 + $0x48] sm:$0xff]  ;;  %s527_s16 = scalar_lea.sflag [#allocation4], %s1195_s30  ;;  %s965_s17 = sshra.s32 %s543_s15, 4  ;;  %s966_s17 = int_to_ptr.hbm [resolvable:$true] %s965_s17 }
  0x3f   : > { %486 = vmatpush.msra.mxu3 %v483_v6  ;;  %v348_v11 = vld [vmem:[%s299_s28] sm:$0xff]  ;;  %v357_v13 = vld [vmem:[#allocation7 + $0x40] sm:$0xff]  ;;  %v478_v16 = vld [vmem:[#allocation10 + $0x48] sm:$0xff]  ;;  %s967_s25 = scalar_lea.hbm %s966_s17, 8  ;;  %s971_s29 = scalar_lea.hbm %s1269_s5, 16 }
  0x40   : > { %367 = vmatpush.msra.mxu0 %v362_v2  ;;  %v480_v12 = vld [vmem:[#allocation10 + $0x58] sm:$0xff]  ;;  %400 = vmatpush.xpose.msra.mxu1 %v348_v11  ;;  %v479_v14 = vld [vmem:[#allocation10 + $0x50] sm:$0xff]  ;;  %v477_v18 = vld [vmem:[#allocation10 + $0x40] sm:$0xff]  ;;  %p968_p1 = scmp.ne.s32.totalorder %s966_s17, %s967_s25  ;;  %p972_p10 = scmp.lt.s32.totalorder %s966_s17, %s1269_s5 }
  0x41   : > { %487 = vmatpush.msra.mxu3 %v482_v7  ;;  %v356_v15 = vld [vmem:[#allocation7 + $0x38] sm:$0xff]  ;;  %v355_v17 = vld [vmem:[#allocation7 + $0x30] sm:$0xff]  ;;  %v354_v19 = vld [vmem:[#allocation7 + $0x28] sm:$0xff]  ;;  %p973_p11 = scmp.lt.s32.totalorder %s971_s29, %s967_s25 }
  0x42   : > { %368 = vmatpush.msra.mxu0 %v361_v3  ;;  %v476_v20 = vld [vmem:[#allocation10 + $0x38] sm:$0xff]  ;;  %v353_v21 = vld [vmem:[#allocation7 + $0x20] sm:$0xff]  ;;  %v475_v22 = vld [vmem:[#allocation10 + $0x30] sm:$0xff]  ;;  %p969_p3 = pnand %p968_p1, %p1169_p4 }
  0x43   : > { %488 = vmatpush.msra.mxu3 %v481_v9  ;;  %v352_v23 = vld [vmem:[#allocation7 + $0x18] sm:$0xff]  ;;  %v474_v24 = vld [vmem:[#allocation10 + $0x28] sm:$0xff]  ;;  %v351_v25 = vld [vmem:[#allocation7 + $0x10] sm:$0xff]  ;;  %p974_p12 = por %p973_p11, %p972_p10 }
  0x44   : > { %369 = vmatpush.msra.mxu0 %v360_v5  ;;  %448 = vmatpush.msrb.mxu1 %v348_v11  ;;  %v473_v26 = vld [vmem:[#allocation10 + $0x20] sm:$0xff]  ;;  %v350_v27 = vld [vmem:[#allocation7 + $0x8] sm:$0xff]  ;;  %v472_v28 = vld [vmem:[#allocation10 + $0x18] sm:$0xff]  ;;  %p970_p9 = pneg %p969_p3 }
  0x45   : > { %489 = vmatpush.msra.mxu3 %v480_v12  ;;  %v349_v29 = vld [vmem:[#allocation7] sm:$0xff]  ;;  %v471_v31 = vld [vmem:[#allocation10 + $0x10] sm:$0xff]  ;;  %v470_v32 = vld [vmem:[#allocation10 + $0x8] sm:$0xff] }
  0x46   : > { %370 = vmatpush.msra.mxu0 %v359_v8  ;;  %v347_v30 = vld [vmem:[%s289_s2] sm:$0xff]  ;;  %v468_v42 = vld [vmem:[#allocation8 + $0x78] sm:$0xff]  ;;  %v467_v43 = vld [vmem:[#allocation8 + $0x70] sm:$0xff]  ;;  %p975_p13 = pnand %p974_p12, %p970_p9 }
  0x47   : > { %490 = vmatpush.msra.mxu3 %v479_v14  ;;  %v469_v33 = vld [vmem:[#allocation10] sm:$0xff]  ;;  %505 = vmatpush.msra.mxu2 %v468_v42  ;;  %v466_v44 = vld [vmem:[#allocation8 + $0x68] sm:$0xff]  ;;  %v464_v46 = vld [vmem:[#allocation8 + $0x58] sm:$0xff] }
  0x48   : > { %371 = vmatpush.msra.mxu0 %v358_v10  ;;  %v465_v45 = vld [vmem:[#allocation8 + $0x60] sm:$0xff]  ;;  %v463_v47 = vld [vmem:[#allocation8 + $0x50] sm:$0xff]  ;;  %v462_v48 = vld [vmem:[#allocation8 + $0x48] sm:$0xff] }
  0x49   : > { %491 = vmatpush.msra.mxu3 %v478_v16  ;;  %506 = vmatpush.msra.mxu2 %v467_v43  ;;  %v461_v50 = vld [vmem:[#allocation8 + $0x40] sm:$0xff]  ;;  %v460_v51 = vld [vmem:[#allocation8 + $0x38] sm:$0xff]  ;;  %v459_v52 = vld [vmem:[#allocation8 + $0x30] sm:$0xff] }
  0x4a   : > { %372 = vmatpush.msra.mxu0 %v357_v13  ;;  %v458_v53 = vld [vmem:[#allocation8 + $0x28] sm:$0xff]  ;;  %v457_v56 = vld [vmem:[#allocation8 + $0x20] sm:$0xff]  ;;  %v456_v58 = vld [vmem:[#allocation8 + $0x18] sm:$0xff] }
  0x4b   : > { %492 = vmatpush.msra.mxu3 %v477_v18  ;;  %507 = vmatpush.msra.mxu2 %v466_v44  ;;  %v455_v62 = vld [vmem:[#allocation8 + $0x10] sm:$0xff]  ;;  %v454_v0 = vld [vmem:[#allocation8 + $0x8] sm:$0xff]  ;;  %v453_v5 = vld [vmem:[#allocation8] sm:$0xff] }
  0x4c   : > { %373 = vmatpush.msra.mxu0 %v356_v15 }
  0x4d   : > { %493 = vmatpush.msra.mxu3 %v476_v20  ;;  %508 = vmatpush.msra.mxu2 %v465_v45 }
  0x4e   : > { %374 = vmatpush.msra.mxu0 %v355_v17 }
  0x4f   : > { %494 = vmatpush.msra.mxu3 %v475_v22  ;;  %509 = vmatpush.msra.mxu2 %v464_v46 }
  0x50   : > { %375 = vmatpush.msra.mxu0 %v354_v19 }
  0x51   : > { %495 = vmatpush.msra.mxu3 %v474_v24  ;;  %510 = vmatpush.msra.mxu2 %v463_v47 }
  0x52   : > { %376 = vmatpush.msra.mxu0 %v353_v21 }
  0x53   : > { %496 = vmatpush.msra.mxu3 %v473_v26  ;;  %511 = vmatpush.msra.mxu2 %v462_v48 }
  0x54   : > { %377 = vmatpush.msra.mxu0 %v352_v23 }
  0x55   : > { %497 = vmatpush.msra.mxu3 %v472_v28  ;;  %512 = vmatpush.msra.mxu2 %v461_v50 }
  0x56   : > { %378 = vmatpush.msra.mxu0 %v351_v25 }
  0x57   : > { %498 = vmatpush.msra.mxu3 %v471_v31  ;;  %513 = vmatpush.msra.mxu2 %v460_v51 }
  0x58   : > { %379 = vmatpush.msra.mxu0 %v350_v27 }
  0x59   : > { %499 = vmatpush.msra.mxu3 %v470_v32  ;;  %514 = vmatpush.msra.mxu2 %v459_v52 }
  0x5a   : > { %380 = vmatpush.msra.mxu0 %v349_v29 }
  0x5b   : > { %381 = vmatmul.f32.vlgmr.msra.gmra.mxu0 %v347_v30  ;;  %500 = vmatpush.msra.mxu3 %v469_v33 }
  0x5c   : > { %515 = vmatpush.msra.mxu2 %v458_v53 }
  0x5e   : > { %516 = vmatpush.msra.mxu2 %v457_v56 }
  0x60   : > { %517 = vmatpush.msra.mxu2 %v456_v58 }
  0x62   : > { %518 = vmatpush.msra.mxu2 %v455_v62 }
  0x64   : > { %519 = vmatpush.msra.mxu2 %v454_v0 }
  0x66   : > { %520 = vmatpush.msra.mxu2 %v453_v5 }
  0xd8   : > { %v382_v34 = vpop.f32.mrf.mxu0 }
  0xd9   : > { %401 = vmatmul.f32.vlgmr.msra.gmra.mxu1 %v382_v34  ;;  %501 = vmatmul.f32.vlgmr.msra.gmra.mxu3 %v382_v34 }
 0x156   : > { %v402_v35 = vpop.f32.mrf.mxu1 }
 0x157   : > { %v406_v36 = vsel %vm405_vm0, %v402_v35, -inf }
 0x158   : > { %407 = vmax.xlane.f32.xlu0 %v406_v36 }
 0x15c   : > { %v502_v7 = vpop.f32.mrf.mxu3 }
 0x1cb   : > { %v408_v37 = vpop.xlane.xlu0 %407 }
 0x1cc   : > { %v409_v38 = vsub.f32 %v402_v35, %v408_v37 }
 0x1ce   : > { %v410_v39 = vmul.f32 1.442695, %v409_v38 }
 0x1d0   : > { %797 = vpow2.f32 %v410_v39 }
 0x1d6   : > { %v798_v40 = vpop.eup %797 }
 0x1d7   : > { %v412_v41 = vsel %vm405_vm0, %v798_v40, 0.0 }
 0x1d8   : > { %413 = vadd.xlane.f32.xlu0 %v412_v41 }
 0x24b   : > { %v414_v49 = vpop.xlane.xlu0 %413 }
 0x24c   : > { %799 = vrcp.f32 %v414_v49  ;;  %v426_v59 = vand.u32 2147483648, %v414_v49  ;;  %v424_v61 = vand.u32 2147483647, %v414_v49  ;;  %vm420_vm2 = vweird.f32 %v414_v49 }
 0x24e   : > { %v427_v1 = vor.u32 1.1754944e-38, %v426_v59  ;;  %vm425_vm4 = vcmp.eq.f32.partialorder %v424_v61, 8.507059e+37 }
 0x252   : > { %v800_v54 = vpop.eup %799 }
 0x253   : > { %v416_v55 = vmul.f32 %v800_v54, %v414_v49  ;;  %vm421_vm1 = vweird.f32 %v800_v54 }
 0x254   : > { %vm422_vm3 = vmor %vm420_vm2, %vm421_vm1 }
 0x255   : > { %v417_v57 = vsub.f32 1.0, %v416_v55 }
 0x257   : > { %v418_v60 = vmul.f32 %v800_v54, %v417_v57 }
 0x259   : > { %v419_v63 = vadd.f32 %v800_v54, %v418_v60 }
 0x25b   : > { %v423_v2 = vsel %vm422_vm3, %v800_v54, %v419_v63 }
 0x25c   : > { %v428_v3 = vsel %vm425_vm4, %v427_v1, %v423_v2 }
 0x25d   : > { %v429_v4 = vmul.f32 %v798_v40, %v428_v3 }
 0x25f   : > { %692 = vmatmul.msk.f32.vlgmr.msrb.gmra.mxu1 %vm405_vm0, %v429_v4 }
 0x2dc   : > { %v450_v6 = vpop.f32.mrf.mxu1 }
 0x2dd   : > { %521 = vmatmul.f32.vlgmr.msra.gmra.mxu2 %v450_v6 }
 0x360   : > { %v522_v8 = vpop.f32.mrf.mxu2 }
 0x361   : > { %v523_v9 = vadd.f32 %v522_v8, %v502_v7 }
 0x363   : > { %525 = vst [vmem:[%s346_s11] sm:$0xff] %v523_v9 }
 0x364   : > { %978 = shalt.err (!%p975_p13)
}
 0x365   : > { %713 = dma.vmem_to_hbm [thread:$0]  (%p1169_p4), %s541_s12, 128, %s543_s15, %s527_s16  }
 0x366 PF: > { %s554_s30 = sand.u32 1, %s1025_s18   ;;  %p733_p0 = pnand %p680_p6, %p1177_p7 }
 0x367   : > { %s555_s13 = scalar_lea.sflag [#allocation4], %s554_s30 }
 0x368   : > { %p734_p2 = pneg %p733_p0 }
 0x36a   : > { %1020 = dma.done.wait (%p734_p2), %s555_s13, 128  }
 0x36b   : > { %1022 = vsyncadd (%p734_p2), %s555_s13, 4294967168  ;;  %s25_s23 = sadd.s32 1, %s1045_s23   ;;  %s1287_s4 = sld [smem:[#allocation19_spill]] }
 0x36c   : > { %p22_p5 = scmp.ge.s32.totalorder %s25_s23, 4   ;;  %s1288_s21 = sld [smem:[#allocation17_spill]] }
 0x36d   : > { %s1289_s22 = sld [smem:[#allocation18_spill]]  ;;  %s1290_s18 = smov %s1029_s19 }
 0x36e   : > { %s1291_s19 = smov %s1033_s20  ;;  %24 = sbr.rel (!%p22_p5) target bundleno = 13 (0xd), region = 110 }
 0x371   : > { %s1292_s20 = smov %s1287_s4 }
 0x373   :  { %561 = vsyncpa [#allocation3], 1 }
 0x374   :  { %563 = vsyncpa [#allocation3 + $0x1], 1 }
 0x375   :  { %564 = vsyncpa [#allocation6], 1 }
 0x376   :  { %566 = vsyncpa [#allocation6 + $0x1], 1 }
 0x377   :  { %567 = vsyncpa [#allocation9], 1 }
 0x378   :  { %568 = vsyncpa [#allocation4], 1 }
 0x379   :  { %570 = vsyncpa [#allocation4 + $0x1], 1 }

</bundles_post_ra>
